<compile_context>
chip_gen: v5e
topology: v5e:2x2
jax: 0.10.0
libtpu: 0.0.40
codegen_flags: <defaults>
</compile_context>

<pallas_src>
import functools

import numpy as np
import jax
import jax.numpy as jnp
from jax import lax
from jax.experimental import pallas as pl
from jax.experimental.pallas import tpu as pltpu

_NEG_GUMBEL_PAD = -1e30  # padded sequence slots can never win the argmax


def sinusoidal_pe_np(seq_len: int, d_model: int) -> np.ndarray:
    """Standard sinusoidal positional encoding table, shape (seq_len, d_model)."""
    position = np.arange(seq_len, dtype=np.float32)[:, None]
    div_term = np.exp(
        np.arange(0, d_model, 2, dtype=np.float32) * (-np.log(10000.0) / d_model))
    pe = np.zeros((seq_len, d_model), dtype=np.float32)
    pe[:, 0::2] = np.sin(position * div_term)
    pe[:, 1::2] = np.cos(position * div_term)
    return pe


@functools.lru_cache(maxsize=None)
def _pe_table(seq_len: int, d_model: int, dtype_name: str):
    return jnp.asarray(sinusoidal_pe_np(seq_len, d_model), dtype=jnp.dtype(dtype_name))


@functools.lru_cache(maxsize=None)
def _head_mask(N: int, A: int):
    """Block-diagonal head selector, (N, N*A) f32, built once on the host."""
    mask = np.zeros((N, N * A), dtype=np.float32)
    for n in range(N):
        mask[n, n * A:(n + 1) * A] = 1.0
    return jnp.asarray(mask)


def _vmem_budget_bytes() -> int:
    """Per-step VMEM budget by TPU generation (conservative if unknown)."""
    try:
        kind = jax.devices()[0].device_kind.lower()
    except Exception:
        kind = ""
    if ("v5e" in kind) or ("v5 lite" in kind) or ("v5litepod" in kind) or ("v6" in kind):
        return 100 << 20      # 128 MiB physical VMEM -> ~100 MiB usable budget
    return 48 << 20           # v7x (64 MiB physical) and unknown chips: stay safe


def _step_vmem_bytes(bt, S, H, N, NA, xb, gb, wb, ob):
    """Rough per-grid-step VMEM working set (double-buffered I/O + intermediates)."""
    in_x = bt * S * H * xb
    in_g = N * bt * S * gb
    consts = S * H * xb + 2 * H * NA * wb + N * NA * 4       # pe, Wq, Wk, mask
    outs = N * bt * (H + S) * ob
    inter = bt * S * H * 4 + 2 * bt * S * NA * 4 + 6 * bt * S * 4  # pos, q, qk, misc
    return 2 * (in_x + in_g + consts + outs) + inter


def _choose_bt(B, S, H, N, NA, xb, gb, wb, ob, budget):
    """Largest divisor of B whose working set fits the budget.

    Capped at B//2 so there are at least 2 grid steps (v7x megacore sharding of
    the 'parallel' batch axis + DMA of step i+1 overlapping compute of step i).
    """
    cap = B if B == 1 else max(1, B // 2)
    best = 1
    for bt in range(1, cap + 1):
        if B % bt == 0 and _step_vmem_bytes(bt, S, H, N, NA, xb, gb, wb, ob) <= budget:
            best = bt
    return best


@functools.lru_cache(maxsize=None)
def _build_call(B, S, S_real, H, N, A, Bt, temperature,
                x_dtype_name, w_dtype_name, g_dtype_name, vmem_limit):
    NA = N * A
    G = B // Bt
    scale = 1.0 / float(H) ** 0.5
    inv_tau = 1.0 / float(temperature)
    inv_s = 1.0 / float(S_real)
    out_dtype = jnp.dtype(x_dtype_name)

    def kernel(x_ref, pe_ref, wq_ref, wk_ref, mask_ref, g_ref, ox_ref, oa_ref):
        x = x_ref[...]                                        # (Bt, S, H)
        pos = x + pe_ref[...][None, :, :]                     # positional encoding add

        # Q projection: one (Bt*S, H) @ (H, N*A) MXU matmul for the whole tile.
        # (reshape is a layout no-op since S % 8 == 0 is guaranteed by the wrapper)
        q = jnp.dot(pos.reshape(Bt * S, H), wq_ref[...],
                    preferred_element_type=jnp.float32).reshape(Bt, S, NA)

        # Key-mean shortcut: the module only uses the key-mean of the scores,
        #   logits[b,n,s] = Q[b,s,n,:] . ((mean_t pos[b,t,:]) @ Wk)[n,:] / sqrt(H)
        # so K is only ever applied to the sequence-mean of pos.
        pos_mean = jnp.sum(pos, axis=1) * inv_s               # (Bt, H)
        kbar = jnp.dot(pos_mean, wk_ref[...],
                       preferred_element_type=jnp.float32)    # (Bt, N*A) f32

        mask = mask_ref[...]                                  # (N, N*A) f32, precomputed
        iota_s = lax.broadcasted_iota(jnp.int32, (Bt, S), 1)

        # N is tiny (1-2): static unroll; every slab below is a dense
        # (Bt sublanes) x (S or H lanes) tile -- no padded vregs, no masked stores.
        for n in range(N):
            kb_n = kbar * mask[n:n + 1, :]                                # (Bt, N*A)
            logits = jnp.sum(q * kb_n[:, None, :], axis=-1) * scale       # (Bt, S)
            z = (logits + g_ref[n, 0].astype(jnp.float32)) * inv_tau      # (Bt, S)

            # Hard gumbel-softmax forward value = one-hot(argmax), first-index
            # tie-break (matches torch/jnp argmax).
            # TODO(synk): NaN logits would give an all-zero row here (argmax ref
            #             would give index 0); not handled.
            zmax = jnp.max(z, axis=-1, keepdims=True)
            idx = jnp.min(jnp.where(z >= zmax, iota_s, S), axis=-1, keepdims=True)
            onehot = (iota_s == idx).astype(jnp.float32)                  # (Bt, S)
            oa_ref[n, 0] = onehot.astype(out_dtype)

            # Attended output = one-hot row select; exact in any dtype since
            # exactly one weight is 1.0 (VPU multiply + sublane reduce).
            xout = jnp.sum(onehot.astype(x.dtype)[:, :, None] * x, axis=1)  # (Bt, H)
            ox_ref[n, 0] = xout.astype(out_dtype)

    out_shape = (
        jax.ShapeDtypeStruct((N, G, Bt, H), out_dtype),   # attended x (head-major)
        jax.ShapeDtypeStruct((N, G, Bt, S), out_dtype),   # alphas (head-major)
    )
    return pl.pallas_call(
        kernel,
        out_shape=out_shape,
        grid=(G,),
        in_specs=[
            pl.BlockSpec((Bt, S, H), lambda b: (b, 0, 0)),        # x
            pl.BlockSpec((S, H), lambda b: (0, 0)),               # PE table
            pl.BlockSpec((H, NA), lambda b: (0, 0)),              # Wq (transposed)
            pl.BlockSpec((H, NA), lambda b: (0, 0)),              # Wk (transposed)
            pl.BlockSpec((N, NA), lambda b: (0, 0)),              # head mask
            pl.BlockSpec((N, 1, Bt, S), lambda b: (0, b, 0, 0)),  # gumbel noise
        ],
        out_specs=(
            pl.BlockSpec((N, 1, Bt, H), lambda b: (0, b, 0, 0)),
            pl.BlockSpec((N, 1, Bt, S), lambda b: (0, b, 0, 0)),
        ),
        compiler_params=pltpu.CompilerParams(
            dimension_semantics=("parallel",),
            vmem_limit_bytes=int(vmem_limit)),
    )


def hard_attention_forward(x, wq, wk, gumbel, *, N, attention_size, temperature):
    """Forward of HardAttentionLayer. Returns (x_out (B,N,H), alphas (B,N,S))."""
    B, S, H = x.shape
    A = attention_size
    NA = N * A
    assert wq.shape == (H, NA) and wk.shape == (H, NA)
    assert gumbel.shape == (B, N, S)

    S_pad = ((S + 7) // 8) * 8           # keep in-kernel reshapes layout no-ops
    xb = jnp.dtype(x.dtype).itemsize
    gb = jnp.dtype(gumbel.dtype).itemsize
    wb = jnp.dtype(wq.dtype).itemsize
    budget = _vmem_budget_bytes()
    Bt = _choose_bt(B, S_pad, H, N, NA, xb, gb, wb, xb, budget)
    G = B // Bt
    est = _step_vmem_bytes(Bt, S_pad, H, N, NA, xb, gb, wb, xb)
    vmem_limit = int(min(budget, max(2 * est, 16 << 20)))

    pe = _pe_table(S, H, jnp.dtype(x.dtype).name)
    if S_pad != S:
        x = jnp.pad(x, ((0, 0), (0, S_pad - S), (0, 0)))
        pe = jnp.pad(pe, ((0, S_pad - S), (0, 0)))
        gumbel = jnp.pad(gumbel, ((0, 0), (0, 0), (0, S_pad - S)),
                         constant_values=_NEG_GUMBEL_PAD)

    # Head-major, batch-tiled layouts for the small tensors (dense in-kernel slabs).
    g_k = jnp.transpose(gumbel, (1, 0, 2)).reshape(N, G, Bt, S_pad)
    mask = _head_mask(N, A)

    call = _build_call(B, S_pad, S, H, N, A, Bt, float(temperature),
                       jnp.dtype(x.dtype).name, jnp.dtype(wq.dtype).name,
                       jnp.dtype(gumbel.dtype).name, vmem_limit)
    xo4, a4 = call(x, pe, wq, wk, mask, g_k)

    x_out = jnp.transpose(xo4.reshape(N, B, H), (1, 0, 2))
    alphas = jnp.transpose(a4.reshape(N, B, S_pad), (1, 0, 2))[:, :, :S]
    return x_out, alphas


def ref_forward(x, pe, wq, wk, gumbel, tau, N, A):
    """Pure-JAX reference mirroring the PyTorch forward (same gumbel noise)."""
    B, S, H = x.shape
    pos = x + pe[None]
    Q = (pos @ wq).reshape(B, S, N, A).transpose(0, 2, 1, 3)
    K = (pos @ wk).reshape(B, S, N, A).transpose(0, 2, 1, 3)
    attn = jnp.einsum("bnsh,bnth->bnst", Q, K) / (H ** 0.5)
    attn = jnp.sum(attn, axis=-1) / S                         # (B, N, S)
    z = (attn + gumbel) / tau
    alphas = jax.nn.one_hot(jnp.argmax(z, axis=-1), S, dtype=jnp.float32)
    xo = jnp.einsum("bns,bsh->bnh", alphas, x)
    return xo, alphas


if __name__ == "__main__":
    B, S, H = 2, 8, 32          # batch, sequence_length, hidden_size
    N, A = 2, 16                # number of hard-attention heads, attention_size
    tau = 0.1

    key = jax.random.PRNGKey(0)
    kx, kq, kk, kg = jax.random.split(key, 4)
    x = jax.random.normal(kx, (B, S, H), dtype=jnp.float32)

    # Deterministic Linear weights (bias=False); stored as (H, N*A) == torch W.T
    bound = 1.0 / np.sqrt(H)
    wq = jax.random.uniform(kq, (H, N * A), minval=-bound, maxval=bound,
                            dtype=jnp.float32)
    wk = jax.random.uniform(kk, (H, N * A), minval=-bound, maxval=bound,
                            dtype=jnp.float32)

    # Gumbel noise for the hard gumbel-softmax, sampled once outside the kernel.
    gumbel = jax.random.gumbel(kg, (B, N, S), dtype=jnp.float32)

    x_out, alphas = hard_attention_forward(
        x, wq, wk, gumbel, N=N, attention_size=A, temperature=tau)
    x_out, alphas = jax.block_until_ready((x_out, alphas))

    # Sanity check against a pure-JAX reference of the PyTorch forward.
    xo_ref, a_ref = ref_forward(x, jnp.asarray(sinusoidal_pe_np(S, H)),
                                wq, wk, gumbel, tau, N, A)
    assert x_out.shape == (B, N, H) and alphas.shape == (B, N, S)
    assert jnp.allclose(alphas, a_ref), "alphas mismatch vs reference"
    assert jnp.allclose(x_out, xo_ref, atol=1e-5), "x_out mismatch vs reference"
    assert jnp.allclose(jnp.sum(alphas, axis=-1), 1.0), "alphas not one-hot"

    print("KERNEL_OK")
</pallas_src>

<mosaic_0001>
module attributes {stable_mosaic.version = 11 : i64} {
  func.func @kernel(%arg0: i32, %arg1: memref<1x8x32xf32, #tpu.memory_space<vmem>>, %arg2: memref<8x32xf32, #tpu.memory_space<vmem>>, %arg3: memref<32x32xf32, #tpu.memory_space<vmem>>, %arg4: memref<32x32xf32, #tpu.memory_space<vmem>>, %arg5: memref<2x32xf32, #tpu.memory_space<vmem>>, %arg6: memref<2x1x1x8xf32, #tpu.memory_space<vmem>>, %arg7: memref<2x1x1x32xf32, #tpu.memory_space<vmem>>, %arg8: memref<2x1x1x8xf32, #tpu.memory_space<vmem>>) attributes {dimension_semantics = [#tpu.dimension_semantics<parallel>], iteration_bounds = array<i64: 2>, scalar_prefetch = 0 : i64, scratch_operands = 0 : i64, tpu.core_type = #tpu.core_type<tc>, window_params = [{transform_indices = @transform_0, window_bounds = array<i64: 1, 8, 32>}, {pipeline_mode = #tpu.pipeline_mode<synchronous>, transform_indices = @transform_1, window_bounds = array<i64: 8, 32>}, {pipeline_mode = #tpu.pipeline_mode<synchronous>, transform_indices = @transform_2, window_bounds = array<i64: 32, 32>}, {pipeline_mode = #tpu.pipeline_mode<synchronous>, transform_indices = @transform_3, window_bounds = array<i64: 32, 32>}, {pipeline_mode = #tpu.pipeline_mode<synchronous>, transform_indices = @transform_4, window_bounds = array<i64: 2, 32>}, {transform_indices = @transform_5, window_bounds = array<i64: 2, 1, 1, 8>}, {transform_indices = @transform_6, window_bounds = array<i64: 2, 1, 1, 32>}, {transform_indices = @transform_7, window_bounds = array<i64: 2, 1, 1, 8>}]} {
    %c0 = arith.constant 0 : index
    %c0_0 = arith.constant 0 : index
    %c0_1 = arith.constant 0 : index
    %0 = vector.load %arg1[%c0, %c0_0, %c0_1] : memref<1x8x32xf32, #tpu.memory_space<vmem>>, vector<1x8x32xf32>
    %c0_2 = arith.constant 0 : index
    %c0_3 = arith.constant 0 : index
    %1 = vector.load %arg2[%c0_2, %c0_3] : memref<8x32xf32, #tpu.memory_space<vmem>>, vector<8x32xf32>
    %2 = vector.shape_cast %1 : vector<8x32xf32> to vector<1x8x32xf32>
    %3 = arith.addf %0, %2 : vector<1x8x32xf32>
    %4 = vector.shape_cast %3 : vector<1x8x32xf32> to vector<8x32xf32>
    %c0_4 = arith.constant 0 : index
    %c0_5 = arith.constant 0 : index
    %5 = vector.load %arg3[%c0_4, %c0_5] : memref<32x32xf32, #tpu.memory_space<vmem>>, vector<32x32xf32>
    %cst = arith.constant dense<0.000000e+00> : vector<8x32xf32>
    %6 = tpu.matmul %4, %5, %cst {dimension_numbers = #tpu.dot_dimension_numbers<[1], [0], [0], [1], [0, 0, 1, 1], [], []>} : vector<8x32xf32>, vector<32x32xf32>, vector<8x32xf32> -> vector<8x32xf32>
    %7 = vector.shape_cast %6 : vector<8x32xf32> to vector<1x8x32xf32>
    %cst_6 = arith.constant dense<0.000000e+00> : vector<1x32xf32>
    %8 = vector.multi_reduction <add>, %3, %cst_6 [1] : vector<1x8x32xf32> to vector<1x32xf32>
    %cst_7 = arith.constant 1.250000e-01 : f32
    %9 = vector.broadcast %cst_7 : f32 to vector<1x32xf32>
    %10 = arith.mulf %8, %9 : vector<1x32xf32>
    %c0_8 = arith.constant 0 : index
    %c0_9 = arith.constant 0 : index
    %11 = vector.load %arg4[%c0_8, %c0_9] : memref<32x32xf32, #tpu.memory_space<vmem>>, vector<32x32xf32>
    %cst_10 = arith.constant dense<0.000000e+00> : vector<1x32xf32>
    %12 = tpu.matmul %10, %11, %cst_10 {dimension_numbers = #tpu.dot_dimension_numbers<[1], [0], [0], [1], [0, 0, 1, 1], [], []>} : vector<1x32xf32>, vector<32x32xf32>, vector<1x32xf32> -> vector<1x32xf32>
    %c0_11 = arith.constant 0 : index
    %c0_12 = arith.constant 0 : index
    %13 = vector.load %arg5[%c0_11, %c0_12] : memref<2x32xf32, #tpu.memory_space<vmem>>, vector<2x32xf32>
    %14 = tpu.iota {dimensions = array<i32: 1>} : vector<1x8xi32>
    %15 = vector.extract_strided_slice %13 {offsets = [0, 0], sizes = [1, 32], strides = [1, 1]} : vector<2x32xf32> to vector<1x32xf32>
    %16 = arith.mulf %12, %15 : vector<1x32xf32>
    %17 = vector.shape_cast %16 : vector<1x32xf32> to vector<1x1x32xf32>
    %18 = vector.broadcast %17 : vector<1x1x32xf32> to vector<1x8x32xf32>
    %19 = arith.mulf %7, %18 : vector<1x8x32xf32>
    %cst_13 = arith.constant dense<0.000000e+00> : vector<1x8xf32>
    %20 = vector.multi_reduction <add>, %19, %cst_13 [2] : vector<1x8x32xf32> to vector<1x8xf32>
    %cst_14 = arith.constant 0.176776692 : f32
    %21 = vector.broadcast %cst_14 : f32 to vector<1x8xf32>
    %22 = arith.mulf %20, %21 : vector<1x8xf32>
    %c0_15 = arith.constant 0 : index
    %c0_16 = arith.constant 0 : index
    %c0_17 = arith.constant 0 : index
    %c0_18 = arith.constant 0 : index
    %23 = vector.load %arg6[%c0_15, %c0_16, %c0_17, %c0_18] : memref<2x1x1x8xf32, #tpu.memory_space<vmem>>, vector<1x1x1x8xf32>
    %24 = vector.shape_cast %23 : vector<1x1x1x8xf32> to vector<1x8xf32>
    %25 = arith.addf %22, %24 : vector<1x8xf32>
    %cst_19 = arith.constant 1.000000e+01 : f32
    %26 = vector.broadcast %cst_19 : f32 to vector<1x8xf32>
    %27 = arith.mulf %25, %26 : vector<1x8xf32>
    %cst_20 = arith.constant dense<0xFF800000> : vector<1xf32>
    %28 = vector.multi_reduction <maximumf>, %27, %cst_20 [1] : vector<1x8xf32> to vector<1xf32>
    %29 = vector.shape_cast %28 : vector<1xf32> to vector<1x1xf32>
    %30 = vector.broadcast %29 : vector<1x1xf32> to vector<1x8xf32>
    %31 = arith.cmpf oge, %27, %30 : vector<1x8xf32>
    %c8_i32 = arith.constant 8 : i32
    %32 = vector.broadcast %c8_i32 : i32 to vector<1x8xi32>
    %33 = arith.select %31, %14, %32 : vector<1x8xi1>, vector<1x8xi32>
    %cst_21 = arith.constant dense<2147483647> : vector<1xi32>
    %34 = vector.multi_reduction <minsi>, %33, %cst_21 [1] : vector<1x8xi32> to vector<1xi32>
    %35 = vector.shape_cast %34 : vector<1xi32> to vector<1x1xi32>
    %36 = vector.broadcast %35 : vector<1x1xi32> to vector<1x8xi32>
    %37 = arith.cmpi eq, %14, %36 : vector<1x8xi32>
    %38 = arith.extui %37 : vector<1x8xi1> to vector<1x8xi32>
    %39 = arith.sitofp %38 : vector<1x8xi32> to vector<1x8xf32>
    %c0_22 = arith.constant 0 : index
    %c0_23 = arith.constant 0 : index
    %c0_24 = arith.constant 0 : index
    %c0_25 = arith.constant 0 : index
    %40 = vector.load %arg8[%c0_22, %c0_23, %c0_24, %c0_25] : memref<2x1x1x8xf32, #tpu.memory_space<vmem>>, vector<1x1x1x8xf32>
    %41 = vector.shape_cast %40 : vector<1x1x1x8xf32> to vector<1x8xf32>
    %42 = vector.shape_cast %39 : vector<1x8xf32> to vector<1x1x1x8xf32>
    tpu.vector_store %arg8[%c0_22, %c0_23, %c0_24, %c0_25], %42 {strides = array<i32>} : memref<2x1x1x8xf32, #tpu.memory_space<vmem>>, vector<1x1x1x8xf32>,
    %43 = vector.shape_cast %39 : vector<1x8xf32> to vector<1x8x1xf32>
    %44 = vector.broadcast %43 : vector<1x8x1xf32> to vector<1x8x32xf32>
    %45 = arith.mulf %44, %0 : vector<1x8x32xf32>
    %cst_26 = arith.constant dense<0.000000e+00> : vector<1x32xf32>
    %46 = vector.multi_reduction <add>, %45, %cst_26 [1] : vector<1x8x32xf32> to vector<1x32xf32>
    %c0_27 = arith.constant 0 : index
    %c0_28 = arith.constant 0 : index
    %c0_29 = arith.constant 0 : index
    %c0_30 = arith.constant 0 : index
    %47 = vector.load %arg7[%c0_27, %c0_28, %c0_29, %c0_30] : memref<2x1x1x32xf32, #tpu.memory_space<vmem>>, vector<1x1x1x32xf32>
    %48 = vector.shape_cast %47 : vector<1x1x1x32xf32> to vector<1x32xf32>
    %49 = vector.shape_cast %46 : vector<1x32xf32> to vector<1x1x1x32xf32>
    tpu.vector_store %arg7[%c0_27, %c0_28, %c0_29, %c0_30], %49 {strides = array<i32>} : memref<2x1x1x32xf32, #tpu.memory_space<vmem>>, vector<1x1x1x32xf32>,
    %50 = vector.extract_strided_slice %13 {offsets = [1, 0], sizes = [1, 32], strides = [1, 1]} : vector<2x32xf32> to vector<1x32xf32>
    %51 = arith.mulf %12, %50 : vector<1x32xf32>
    %52 = vector.shape_cast %51 : vector<1x32xf32> to vector<1x1x32xf32>
    %53 = vector.broadcast %52 : vector<1x1x32xf32> to vector<1x8x32xf32>
    %54 = arith.mulf %7, %53 : vector<1x8x32xf32>
    %cst_31 = arith.constant dense<0.000000e+00> : vector<1x8xf32>
    %55 = vector.multi_reduction <add>, %54, %cst_31 [2] : vector<1x8x32xf32> to vector<1x8xf32>
    %cst_32 = arith.constant 0.176776692 : f32
    %56 = vector.broadcast %cst_32 : f32 to vector<1x8xf32>
    %57 = arith.mulf %55, %56 : vector<1x8xf32>
    %c1 = arith.constant 1 : index
    %c0_33 = arith.constant 0 : index
    %c0_34 = arith.constant 0 : index
    %c0_35 = arith.constant 0 : index
    %58 = vector.load %arg6[%c1, %c0_33, %c0_34, %c0_35] : memref<2x1x1x8xf32, #tpu.memory_space<vmem>>, vector<1x1x1x8xf32>
    %59 = vector.shape_cast %58 : vector<1x1x1x8xf32> to vector<1x8xf32>
    %60 = arith.addf %57, %59 : vector<1x8xf32>
    %cst_36 = arith.constant 1.000000e+01 : f32
    %61 = vector.broadcast %cst_36 : f32 to vector<1x8xf32>
    %62 = arith.mulf %60, %61 : vector<1x8xf32>
    %cst_37 = arith.constant dense<0xFF800000> : vector<1xf32>
    %63 = vector.multi_reduction <maximumf>, %62, %cst_37 [1] : vector<1x8xf32> to vector<1xf32>
    %64 = vector.shape_cast %63 : vector<1xf32> to vector<1x1xf32>
    %65 = vector.broadcast %64 : vector<1x1xf32> to vector<1x8xf32>
    %66 = arith.cmpf oge, %62, %65 : vector<1x8xf32>
    %c8_i32_38 = arith.constant 8 : i32
    %67 = vector.broadcast %c8_i32_38 : i32 to vector<1x8xi32>
    %68 = arith.select %66, %14, %67 : vector<1x8xi1>, vector<1x8xi32>
    %cst_39 = arith.constant dense<2147483647> : vector<1xi32>
    %69 = vector.multi_reduction <minsi>, %68, %cst_39 [1] : vector<1x8xi32> to vector<1xi32>
    %70 = vector.shape_cast %69 : vector<1xi32> to vector<1x1xi32>
    %71 = vector.broadcast %70 : vector<1x1xi32> to vector<1x8xi32>
    %72 = arith.cmpi eq, %14, %71 : vector<1x8xi32>
    %73 = arith.extui %72 : vector<1x8xi1> to vector<1x8xi32>
    %74 = arith.sitofp %73 : vector<1x8xi32> to vector<1x8xf32>
    %c1_40 = arith.constant 1 : index
    %c0_41 = arith.constant 0 : index
    %c0_42 = arith.constant 0 : index
    %c0_43 = arith.constant 0 : index
    %75 = vector.load %arg8[%c1_40, %c0_41, %c0_42, %c0_43] : memref<2x1x1x8xf32, #tpu.memory_space<vmem>>, vector<1x1x1x8xf32>
    %76 = vector.shape_cast %75 : vector<1x1x1x8xf32> to vector<1x8xf32>
    %77 = vector.shape_cast %74 : vector<1x8xf32> to vector<1x1x1x8xf32>
    tpu.vector_store %arg8[%c1_40, %c0_41, %c0_42, %c0_43], %77 {strides = array<i32>} : memref<2x1x1x8xf32, #tpu.memory_space<vmem>>, vector<1x1x1x8xf32>,
    %78 = vector.shape_cast %74 : vector<1x8xf32> to vector<1x8x1xf32>
    %79 = vector.broadcast %78 : vector<1x8x1xf32> to vector<1x8x32xf32>
    %80 = arith.mulf %79, %0 : vector<1x8x32xf32>
    %cst_44 = arith.constant dense<0.000000e+00> : vector<1x32xf32>
    %81 = vector.multi_reduction <add>, %80, %cst_44 [1] : vector<1x8x32xf32> to vector<1x32xf32>
    %c1_45 = arith.constant 1 : index
    %c0_46 = arith.constant 0 : index
    %c0_47 = arith.constant 0 : index
    %c0_48 = arith.constant 0 : index
    %82 = vector.load %arg7[%c1_45, %c0_46, %c0_47, %c0_48] : memref<2x1x1x32xf32, #tpu.memory_space<vmem>>, vector<1x1x1x32xf32>
    %83 = vector.shape_cast %82 : vector<1x1x1x32xf32> to vector<1x32xf32>
    %84 = vector.shape_cast %81 : vector<1x32xf32> to vector<1x1x1x32xf32>
    tpu.vector_store %arg7[%c1_45, %c0_46, %c0_47, %c0_48], %84 {strides = array<i32>} : memref<2x1x1x32xf32, #tpu.memory_space<vmem>>, vector<1x1x1x32xf32>,
    return
  }
  func.func @transform_0(%arg0: i32) -> (i32, i32, i32) {
    %c0_i32 = arith.constant 0 : i32
    %c0_i32_0 = arith.constant 0 : i32
    %c0_i32_1 = arith.constant 0 : i32
    return %arg0, %c0_i32, %c0_i32_0 : i32, i32, i32
  }
  func.func @transform_1(%arg0: i32) -> (i32, i32) {
    %c0_i32 = arith.constant 0 : i32
    %c0_i32_0 = arith.constant 0 : i32
    %c0_i32_1 = arith.constant 0 : i32
    return %c0_i32, %c0_i32_0 : i32, i32
  }
  func.func @transform_2(%arg0: i32) -> (i32, i32) {
    %c0_i32 = arith.constant 0 : i32
    %c0_i32_0 = arith.constant 0 : i32
    %c0_i32_1 = arith.constant 0 : i32
    return %c0_i32, %c0_i32_0 : i32, i32
  }
  func.func @transform_3(%arg0: i32) -> (i32, i32) {
    %c0_i32 = arith.constant 0 : i32
    %c0_i32_0 = arith.constant 0 : i32
    %c0_i32_1 = arith.constant 0 : i32
    return %c0_i32, %c0_i32_0 : i32, i32
  }
  func.func @transform_4(%arg0: i32) -> (i32, i32) {
    %c0_i32 = arith.constant 0 : i32
    %c0_i32_0 = arith.constant 0 : i32
    %c0_i32_1 = arith.constant 0 : i32
    return %c0_i32, %c0_i32_0 : i32, i32
  }
  func.func @transform_5(%arg0: i32) -> (i32, i32, i32, i32) {
    %c0_i32 = arith.constant 0 : i32
    %c0_i32_0 = arith.constant 0 : i32
    %c0_i32_1 = arith.constant 0 : i32
    %c0_i32_2 = arith.constant 0 : i32
    return %c0_i32, %arg0, %c0_i32_0, %c0_i32_1 : i32, i32, i32, i32
  }
  func.func @transform_6(%arg0: i32) -> (i32, i32, i32, i32) {
    %c0_i32 = arith.constant 0 : i32
    %c0_i32_0 = arith.constant 0 : i32
    %c0_i32_1 = arith.constant 0 : i32
    %c0_i32_2 = arith.constant 0 : i32
    return %c0_i32, %arg0, %c0_i32_0, %c0_i32_1 : i32, i32, i32, i32
  }
  func.func @transform_7(%arg0: i32) -> (i32, i32, i32, i32) {
    %c0_i32 = arith.constant 0 : i32
    %c0_i32_0 = arith.constant 0 : i32
    %c0_i32_1 = arith.constant 0 : i32
    %c0_i32_2 = arith.constant 0 : i32
    return %c0_i32, %arg0, %c0_i32_0, %c0_i32_1 : i32, i32, i32, i32
  }
}

</mosaic_0001>

<bundles_post_ra>
// kernel: tpu_custom_call.1
= control target key start
LH: loop header
LB: loop body
LE: loop exit
PB: predicated region body
PF: predicated region fallthrough
CT: control target
= control target key end

     0   :  { %s1498_s0 = inlined_call_operand.hbm [shape: f32[2,8,32], index: 0, kind: input, shape index: {}]   ;;  %s1499_s1 = inlined_call_operand.hbm [shape: f32[8,32], index: 1, kind: input, shape index: {}]   ;;  %s1500_s2 = inlined_call_operand.hbm [shape: f32[32,32], index: 2, kind: input, shape index: {}]   ;;  %s1501_s3 = inlined_call_operand.hbm [shape: f32[32,32], index: 3, kind: input, shape index: {}]   ;;  %s1502_s4 = inlined_call_operand.hbm [shape: f32[2,32], index: 4, kind: input, shape index: {}]   ;;  %s1503_s5 = inlined_call_operand.vmem [shape: f32[2,2,1,8], index: 5, kind: input, shape index: {}]   ;;  %s1504_s6 = inlined_call_operand.hbm [shape: f32[2,2,1,32], index: 6, kind: output, shape index: {0}]   ;;  %s1505_s7 = inlined_call_operand.hbm [shape: f32[2,2,1,8], index: 7, kind: output, shape index: {1}]  }
   0x1   :  { %1509 = sst [smem:[#allocation23_spill]] %s1499_s1 }
   0x2   :  { %1510 = sst [smem:[#allocation24_spill]] %s1501_s3 }
   0x3   :  { %13 = vsyncpa [#allocation3], 0 }
   0x4   :  { %15 = vsyncpa [#allocation3 + $0x1], 0 }
   0x5   :  { %16 = vsyncpa [#allocation6], 0 }
   0x6   :  { %17 = vsyncpa [#allocation9], 0 }
   0x7   :  { %18 = vsyncpa [#allocation4], 0 }
   0x8   :  { %20 = vsyncpa [#allocation4 + $0x1], 0 }
   0x9   :  { %21 = vsyncpa [#allocation14], 0 }
   0xa   :  { %23 = vsyncpa [#allocation14 + $0x1], 0  ;;  %s1277_s24 = smov 0   ;;  %s1279_s25 = smov 0  }
   0xb   :  { %s1281_s26 = smov 0   ;;  %s1283_s27 = smov 0  }
   0xc LB: > { %s1298_s28 = sadd.s32 4294967295, %s1224_s27   ;;  %s834_s29 = sadd.s32 4294967294, %s1224_s27   ;;  %s1224_s27 = sphi %s1283_s27, %s1523_s27   ;;  %s1220_s26 = sphi %s1281_s26, %s1527_s26   ;;  %s1216_s25 = sphi %s1279_s25, %s1526_s25   ;;  %s1212_s24 = sphi %s1277_s24, %s1525_s24  }
   0xd   : > { %s1302_s30 = sadd.s32 1, %s1224_s27   ;;  %s36_s8 = sadd.s32 1, %s1220_s26 }
   0xe   : > { %1511 = sst [smem:[#allocation20_spill]] %s1302_s30  ;;  %s33_s9 = ssub.s32 %s1224_s27, %s1302_s30 }
   0xf   : > { %p43_p0 = scmp.ne.s32.totalorder %s1220_s26, %s1216_s25  ;;  %p34_p1 = scmp.eq.s32.totalorder %s33_s9, 0 }
  0x10   : > { %p44_p2 = scmp.eq.s32.totalorder %s1224_s27, 0  ;;  %p49_p3 = scmp.ne.s32.totalorder %s1216_s25, %s1212_s24 }
  0x11   : > { %p50_p4 = scmp.eq.s32.totalorder %s1298_s28, 0  ;;  %p183_p7 = scmp.eq.s32.totalorder %s1298_s28, 1 }
  0x12   : > { %s1314_s10 = scalar_select %p34_p1, %s1220_s26, %s36_s8  }
  0x13   : > { %p1316_p5 = por %p44_p2, %p43_p0  ;;  %p1322_p6 = por %p50_p4, %p49_p3 }
  0x14   : > { %1512 = sst [smem:[#allocation21_spill]] %s1314_s10  ;;  %p189_p8 = scmp.eq.s32.totalorder %s834_s29, 1 }
  0x15   : > { %p835_p9 = scmp.ge.s32.totalorder %s1224_s27, 1  ;;  %p222_p10 = scmp.lt.s32.totalorder %s1224_s27, 3 }
  0x16   : > { %p1329_p11 = por %p183_p7, %p43_p0  ;;  %p1333_p12 = por %p189_p8, %p49_p3 }
  0x17   : > { %p1337_p13 = pnand %p835_p9, %p222_p10  ;;  %s1519_s1 = sld [smem:[#allocation23_spill]] }
  0x18   : > { %s1516_s14 = scalar_select %p1333_p12, 1, 0 }
  0x19   : > { %p886_p1 = pneg %p1337_p13  ;;  %s1226_s19 = smov [#allocation5]  }
  0x1a   : > { %1517 = sst [smem:[#allocation22_spill]] %s1516_s14  ;;  %s236_s20 = sshll.u32 %s1226_s19, 4  ;;  %s237_s20 = int_to_ptr.vmem [resolvable:$true] %s236_s20 }
  0x1b   : > { %p1348_p0 = pnand %p886_p1, %p50_p4  ;;  %s1521_s3 = sld [smem:[#allocation24_spill]] }
  0x1c   : > { %s245_s16 = sshll.u32 %s1500_s2, 4  ;;  %s1227_s17 = smov [#allocation8]   ;;  %s246_s16 = int_to_ptr.hbm [resolvable:$true] %s245_s16 }
  0x1d   : > { %s234_s18 = sshll.u32 %s1519_s1, 4  ;;  %s261_s19 = sshll.u32 %s1227_s17, 4  ;;  %s235_s18 = int_to_ptr.hbm [resolvable:$true] %s234_s18  ;;  %s262_s19 = int_to_ptr.vmem [resolvable:$true] %s261_s19 }
  0x1e   : > { %889 = dma.hbm_to_vmem [thread:$0]  (!%p1348_p0), %s235_s18, 128, %s237_s20, [#allocation6]  }
  0x1f   : > { %s1228_s1 = smov 128   ;;  %s1229_s10 = smov 8  }
  0x20   : > { %s1230_s22 = smov [#allocation7]   ;;  %s274_s14 = sshll.u32 %s1502_s4, 4  ;;  %s275_s14 = int_to_ptr.hbm [resolvable:$true] %s274_s14 }
  0x21   : > { %s259_s29 = sshll.u32 %s1521_s3, 4  ;;  %s247_s23 = sshll.u32 %s1230_s22, 4  ;;  %s260_s29 = int_to_ptr.hbm [resolvable:$true] %s259_s29  ;;  %s248_s23 = int_to_ptr.vmem [resolvable:$true] %s247_s23 }
  0x22   : > { %895 = dma.hbm_to_vmem [thread:$0]  (!%p1348_p0), %s260_s29, 512, %s262_s19, [#allocation9], %s1228_s1, %s1228_s1, %s1229_s10  }
  0x23   : > { %892 = dma.hbm_to_vmem [thread:$0]  (!%p1348_p0), %s246_s16, 512, %s248_s23, [#allocation6], %s1228_s1, %s1228_s1, %s1229_s10  }
  0x24   : > { %s1231_s18 = smov [#allocation10]   ;;  %p840_p2 = scmp.ge.s32.totalorder %s1224_s27, 2 }
  0x25   : > { %s276_s20 = sshll.u32 %s1231_s18, 4  ;;  %s287_s29 = sand.u32 (!%p840_p2), 1, %s1220_s26   ;;  %s277_s20 = int_to_ptr.vmem [resolvable:$true] %s276_s20 }
  0x26   : > { %898 = dma.hbm_to_vmem [thread:$0]  (!%p1348_p0), %s275_s14, 32, %s277_s20, [#allocation9]  }
  0x27   : > { %283 = sbr.rel (%p840_p2) target bundleno = 60 (0x3c), region = 32  ;;  %s842_s3 = sshll.u32 (!%p840_p2), %s1224_s27, 3 }
  0x28   : > { %s841_s30 = sshll.u32 (!%p840_p2), %s287_s29, 3  ;;  %s295_s1 = scalar_lea.hbm (!%p840_p2), %s1498_s0, %s842_s3 }
  0x29   : > { %s297_s10 = sshll.u32 (!%p840_p2), %s295_s1, 4  ;;  %s291_s16 = scalar_lea.vmem (!%p840_p2), [#allocation2], %s841_s30  ;;  %s298_s10 = int_to_ptr.hbm [resolvable:$true] %s297_s10 }
  0x2a   : > { %s299_s17 = sshll.u32 (!%p840_p2), %s291_s16, 4  ;;  %s288_s14 = scalar_lea.sflag (!%p840_p2), [#allocation3], %s287_s29  ;;  %s300_s17 = int_to_ptr.vmem [resolvable:$true] %s299_s17 }
  0x2b   : > { %s1090_s21 = sshra.s32 (!%p840_p2), %s298_s10, 4  ;;  %s1096_s18 = scalar_lea.hbm (!%p840_p2), %s1498_s0, 16  ;;  %s1091_s21 = int_to_ptr.hbm [resolvable:$true] %s1090_s21 }
  0x2c   : > { %s1092_s19 = scalar_lea.hbm %s1091_s21, 8  ;;  %p1097_p9 = scmp.lt.s32.totalorder %s1091_s21, %s1498_s0 }
  0x2d   : > { %p1093_p3 = scmp.ne.s32.totalorder %s1091_s21, %s1092_s19  ;;  %p1098_p10 = scmp.lt.s32.totalorder %s1096_s18, %s1092_s19 }
  0x2f   : > { %p1094_p7 = pnand %p1093_p3, %p1316_p5  ;;  %p1099_p1 = por %p1098_p10, %p1097_p9 }
  0x31   : > { %p1095_p8 = pneg %p1094_p7 }
  0x33   : > { %p1100_p0 = pnand %p1099_p1, %p1095_p8 }
  0x35   : > { %1103 = shalt.err (!%p1100_p0)
}
  0x36   : > { %872 = dma.hbm_to_vmem [thread:$0]  (%p1316_p5), %s298_s10, 128, %s300_s17, %s288_s14  }
  0x37   : > { %305 = sbr.rel (!%p1316_p5) target bundleno = 60 (0x3c), region = 40  ;;  %s843_s3 = sshll.u32 (%p1316_p5), %s287_s29, 1 }
  0x38   : > { %s310_s1 = scalar_lea.vmem (%p1316_p5), %s1503_s5, %s1224_s27  ;;  %s309_s16 = scalar_lea.vmem (%p1316_p5), [#allocation11], %s843_s3 }
  0x39   : > { %v327_v0 = vld [vmem:[%s310_s1] sm:$0x1] (%p1316_p5)  ;;  %v329_v1 = vld [vmem:[%s310_s1 + $0x2] sm:$0x1] (%p1316_p5) }
  0x3a   : > { %328 = vst [vmem:[%s309_s16] sm:$0x1] (%p1316_p5), %v327_v0 }
  0x3b   : > { %330 = vst [vmem:[%s309_s16 + $0x1] sm:$0x1] (%p1316_p5), %v329_v1 }
  0x3c PF: > { %353 = sbr.rel (%p1337_p13) target bundleno = 719 (0x2cf), region = 74  ;;  %s1396_s11 = sand.u32 (!%p1337_p13), 1, %s1216_s25  }
  0x3d   : > { %s845_s29 = sshll.u32 (!%p1337_p13), %s1396_s11, 3  ;;  %s356_s10 = scalar_lea.sflag (!%p1337_p13), [#allocation3], %s1396_s11 }
  0x3e   : > { %s359_s17 = scalar_lea.vmem (!%p1337_p13), [#allocation2], %s845_s29 }
  0x41   : > { %1191 = dma.done.wait (%p1322_p6), %s356_s10, 128  }
  0x42   : > { %1193 = vsyncadd (%p1322_p6), %s356_s10, 4294967168 }
  0x43   : > { %1195 = dma.done.wait (%p50_p4), [#allocation6], 640  }
  0x44   : > { %1197 = vsyncadd (%p50_p4), [#allocation6], 4294966656 }
  0x45   : > { %1199 = dma.done.wait (%p50_p4), [#allocation9], 544  }
  0x46   : > { %1201 = vsyncadd (%p50_p4), [#allocation9], 4294966752  ;;  %v494_v2 = vlaneseq  ;;  %v469_v4 = vld [vmem:[#allocation8 + $0x18] sm:$0xff]  ;;  %v468_v5 = vld [vmem:[#allocation8 + $0x10] sm:$0xff]  ;;  %vm434_vm0 = vcmask 261120   ;;  %s1422_s12 = sshll.u32 %s1396_s11, 1  ;;  %s671_s23 = scalar_lea.hbm %s1505_s7, %s1298_s28 }
  0x47   : > { %v433_v6 = vld [vmem:[#allocation7 + $0x18] sm:$0xff]  ;;  %485 = vmatpush.msra.mxu1 %v469_v4  ;;  %v467_v7 = vld [vmem:[#allocation8 + $0x8] sm:$0xff]  ;;  %v432_v8 = vld [vmem:[#allocation7 + $0x10] sm:$0xff]  ;;  %s388_s15 = scalar_lea.vmem [#allocation11], %s1422_s12  ;;  %v1232_v38 = vmov 0   ;;  %vm515_vm1 = vcmask 7168  }
  0x48   : > { %v1412_v3 = vshrl.u32 %v494_v2, 7  ;;  %450 = vmatpush.msra.mxu0 %v433_v6  ;;  %v1416_v9 = vld [vmem:[%s359_s17] sm:$0xff]  ;;  %v428_v10 = vld [vmem:[#allocation5] sm:$0xff]  ;;  %v466_v13 = vld [vmem:[#allocation8] sm:$0xff]  ;;  %v1428_v37 = vand.u32 127, %v494_v2  ;;  %959 = vset.pattern.permute.xlu2 %v1232_v38  ;;  %vm552_vm10 = vcmask 57344  }
  0x49   : > { %v431_v11 = vld [vmem:[#allocation7 + $0x8] sm:$0xff]  ;;  %486 = vmatpush.msra.mxu1 %v468_v5  ;;  %v429_v12 = vadd.f32 %v428_v10, %v1416_v9  ;;  %v430_v14 = vld [vmem:[#allocation7] sm:$0xff]  ;;  %s426_s14 = scalar_lea.vmem [#allocation13], %s1422_s12  ;;  %s674_s18 = sshll.u32 %s671_s23, 4  ;;  %s675_s18 = int_to_ptr.hbm [resolvable:$true] %s674_s18 }
  0x4a   : > { %958 = vset.pattern.permute.xlu1 %v1412_v3  ;;  %960 = vset.pattern.permute.xlu0 %v1412_v3  ;;  %v968_v23 = vld [vmem:[%s388_s15] ss:$0 sm:$0xff]  ;;  %v969_v24 = vld [vmem:[%s388_s15 + $0x1] ss:$0 sm:$0xff]  ;;  %v493_v25 = vld [vmem:[#allocation10] sm:$0x3] }
  0x4b   : > { %451 = vmatpush.msra.mxu0 %v432_v8  ;;  %487 = vmatpush.msra.mxu1 %v467_v7  ;;  %v458_v15 = vsel %vm434_vm0, %v429_v12, 0.0  ;;  %v571_v26 = vrot.slane %v493_v25, 1  ;;  %s672_s21 = sshll.u32 %s426_s14, 4  ;;  %s647_s20 = scalar_lea.sflag [#allocation14], %s1396_s11  ;;  %s673_s21 = int_to_ptr.vmem [resolvable:$true] %s672_s21 }
  0x4c   : > { %v459_v16 = vrot.slane %v458_v15, 4  ;;  %s1132_s8 = sshra.s32 %s675_s18, 4  ;;  %s1138_s1 = scalar_lea.hbm %s1505_s7, 4  ;;  %s1133_s8 = int_to_ptr.hbm [resolvable:$true] %s1132_s8 }
  0x4d   : > { %452 = vmatpush.msra.mxu0 %v431_v11  ;;  %488 = vmatpush.msra.mxu1 %v466_v13  ;;  %s1134_s3 = scalar_lea.hbm %s1133_s8, 2  ;;  %p1139_p13 = scmp.lt.s32.totalorder %s1133_s8, %s1505_s7 }
  0x4e   : > { %v460_v17 = vadd.f32 %v459_v16, %v458_v15  ;;  %p1135_p4 = scmp.ne.s32.totalorder %s1133_s8, %s1134_s3  ;;  %p1140_p3 = scmp.lt.s32.totalorder %s1138_s1, %s1134_s3 }
  0x4f   : > { %453 = vmatpush.msra.mxu0 %v430_v14 }
  0x50   : > { %853 = vmatmul.msk.f32.vlgmr.msra.gmra.mxu0 %vm434_vm0, %v429_v12  ;;  %v461_v18 = vrot.slane %v460_v17, 2  ;;  %p1136_p5 = pnand %p1135_p4, %p1329_p11  ;;  %p1141_p7 = por %p1140_p3, %p1139_p13 }
  0x52   : > { %v462_v19 = vadd.f32 %v461_v18, %v460_v17  ;;  %510 = vperm.xlu1 %958, %v968_v23   ;;  %p1137_p6 = pneg %p1136_p5 }
  0x54   : > { %v463_v20 = vrot.slane %v462_v19, 1  ;;  %p1142_p8 = pnand %p1141_p7, %p1137_p6 }
  0x56   : > { %v464_v21 = vadd.f32 %v463_v20, %v462_v19 }
  0x58   : > { %v465_v22 = vmul.f32 0.125, %v464_v21  ;;  %v1233_v21 = vmov 0.0  }
  0x5a   : > { %854 = vmatmul.msk.f32.vlgmr.msra.gmra.mxu1 %vm434_vm0, %v465_v22  ;;  %588 = vperm.xlu1 %958, %v969_v24  }
  0x62   : > { %961 = vset.pattern.permute.xlu1 %v1232_v38 }
  0xc4   : > { %v511_v39 = vpop.permute.xlu1 %510 }
  0xcc   : > { %v589_v48 = vpop.permute.xlu1 %588 }
  0xcd   : > { %v455_v29 = vpop.f32.mrf.mxu0 }
  0xd7   : > { %v490_v27 = vpop.f32.mrf.mxu1 }
  0xd8   : > { %v496_v28 = vmul.f32 %v493_v25, %v490_v27  ;;  %v573_v31 = vmul.f32 %v571_v26, %v490_v27 }
  0xda   : > { %v497_v30 = vperm.slane %v496_v28, 0  ;;  %v574_v33 = vperm.slane %v573_v31, 0 }
  0xdc   : > { %v498_v32 = vmul.f32 %v497_v30, %v455_v29  ;;  %v575_v35 = vmul.f32 %v574_v33, %v455_v29 }
  0xde   : > { %v499_v34 = vsel %vm434_vm0, %v498_v32, 0.0  ;;  %v576_v36 = vsel %vm434_vm0, %v575_v35, 0.0 }
  0xdf   : > { %500 = vadd.xlane.f32.xlu0 %v499_v34 }
  0xe7   : > { %577 = vadd.xlane.f32.xlu0 %v576_v36 }
  0xfb   : > { %533 = vperm.xlu0 %960, %v1428_v37  }
 0x152   : > { %v501_v40 = vpop.xlane.xlu0 %500 }
 0x153   : > { %v502_v41 = vmul.f32 0.17677669, %v501_v40 }
 0x155   : > { %v513_v42 = vadd.f32 %v511_v39, %v502_v41 }
 0x157   : > { %v514_v43 = vmul.f32 10.0, %v513_v42 }
 0x159   : > { %v516_v44 = vsel %vm515_vm1, %v514_v43, -inf }
 0x15a   : > { %v517_v45 = vrot.slane %v516_v44, 4  ;;  %v578_v46 = vpop.xlane.xlu0 %577 }
 0x15b   : > { %v579_v47 = vmul.f32 0.17677669, %v578_v46 }
 0x15c   : > { %v518_v49 = vmax.f32 %v516_v44, %v517_v45 }
 0x15d   : > { %v591_v50 = vadd.f32 %v589_v48, %v579_v47 }
 0x15e   : > { %v519_v51 = vrot.slane %v518_v49, 2 }
 0x15f   : > { %v592_v52 = vmul.f32 10.0, %v591_v50 }
 0x160   : > { %v520_v53 = vmax.f32 %v518_v49, %v519_v51 }
 0x161   : > { %v593_v54 = vsel %vm515_vm1, %v592_v52, -inf }
 0x162   : > { %v594_v55 = vrot.slane %v593_v54, 4  ;;  %v521_v56 = vrot.slane %v520_v53, 1 }
 0x164   : > { %v595_v57 = vmax.f32 %v593_v54, %v594_v55  ;;  %v522_v58 = vmax.f32 %v520_v53, %v521_v56 }
 0x166   : > { %525 = vperm.xlu2 %959, %v522_v58   ;;  %v596_v59 = vrot.slane %v595_v57, 2 }
 0x168   : > { %v597_v60 = vmax.f32 %v595_v57, %v596_v59 }
 0x16a   : > { %v598_v61 = vrot.slane %v597_v60, 1 }
 0x16c   : > { %v599_v62 = vmax.f32 %v597_v60, %v598_v61 }
 0x16d   : > { %v534_v63 = vpop.permute.xlu0 %533 }
 0x16e   : > { %602 = vperm.xlu2 %959, %v599_v62  }
 0x1c0   : > { %v526_v0 = vpop.permute.xlu2 %525 }
 0x1c1   : > { %vm528_vm2 = vcmp.ge.f32.partialorder %v514_v43, %v526_v0 }
 0x1c2   : > { %v535_v1 = vsel %vm528_vm2, %v534_v63, 8 }
 0x1c3   : > { %v536_v2 = vsel %vm515_vm1, %v535_v1, 2147483647 }
 0x1c4   : > { %v537_v4 = vrot.slane %v536_v2, 4 }
 0x1c6   : > { %vm538_vm3 = vcmp.lt.s32.totalorder %v536_v2, %v537_v4 }
 0x1c7   : > { %v539_v5 = vsel %vm538_vm3, %v536_v2, %v537_v4 }
 0x1c8   : > { %v540_v6 = vrot.slane %v539_v5, 2  ;;  %v603_v7 = vpop.permute.xlu2 %602 }
 0x1c9   : > { %vm605_vm4 = vcmp.ge.f32.partialorder %v592_v52, %v603_v7 }
 0x1ca   : > { %vm541_vm5 = vcmp.lt.s32.totalorder %v539_v5, %v540_v6  ;;  %v606_v8 = vsel %vm605_vm4, %v534_v63, 8 }
 0x1cb   : > { %v607_v10 = vsel %vm515_vm1, %v606_v8, 2147483647  ;;  %v542_v11 = vsel %vm541_vm5, %v539_v5, %v540_v6 }
 0x1cc   : > { %v608_v12 = vrot.slane %v607_v10, 4  ;;  %v543_v13 = vrot.slane %v542_v11, 1 }
 0x1ce   : > { %vm609_vm6 = vcmp.lt.s32.totalorder %v607_v10, %v608_v12  ;;  %vm544_vm7 = vcmp.lt.s32.totalorder %v542_v11, %v543_v13 }
 0x1cf   : > { %v610_v14 = vsel %vm609_vm6, %v607_v10, %v608_v12  ;;  %v545_v15 = vsel %vm544_vm7, %v542_v11, %v543_v13 }
 0x1d0   : > { %v611_v16 = vrot.slane %v610_v14, 2  ;;  %547 = vperm.xlu1 %961, %v545_v15  }
 0x1d2   : > { %vm612_vm8 = vcmp.lt.s32.totalorder %v610_v14, %v611_v16 }
 0x1d3   : > { %v613_v17 = vsel %vm612_vm8, %v610_v14, %v611_v16 }
 0x1d4   : > { %v614_v18 = vrot.slane %v613_v17, 1 }
 0x1d6   : > { %vm615_vm9 = vcmp.lt.s32.totalorder %v613_v17, %v614_v18 }
 0x1d7   : > { %v616_v19 = vsel %vm615_vm9, %v613_v17, %v614_v18 }
 0x1d8   : > { %618 = vperm.xlu2 %959, %v616_v19   ;;  %962 = vset.pattern.permute.xlu1 %v1412_v3 }
 0x232   : > { %v619_v20 = vpop.permute.xlu2 %618 }
 0x233   : > { %vm620_vm11 = vcmp.eq.s32.totalorder %v1428_v37, %v619_v20 }
 0x234   : > { %v857_v22 = vsel %vm620_vm11, 1.0, %v1233_v21 }
 0x235   : > { %858 = vst.msk [vmem:[%s426_s14 + $0x1] sm:$0x1] %vm552_vm10, %v857_v22 }
 0x242   : > { %v548_v23 = vpop.permute.xlu1 %547 }
 0x243   : > { %vm549_vm12 = vcmp.eq.s32.totalorder %v1428_v37, %v548_v23 }
 0x244   : > { %v855_v24 = vsel %vm549_vm12, 1.0, %v1233_v21 }
 0x245   : > { %v963_v25 = vpack.i.bf16 %v857_v22, %v855_v24  ;;  %553 = vst.msk [vmem:[%s426_s14] sm:$0x1] %vm552_vm10, %v855_v24 }
 0x247   : > { %964 = vperm.xlu1 %962, %v963_v25  }
 0x248   : > { %1145 = shalt.err (!%p1142_p8)
}
 0x249   : > { %s1234_s10 = smov 16   ;;  %s1235_s17 = smov 32   ;;  %vm568_vm13 = vcmask 253952  }
 0x24a   : > { %s1236_s15 = smov 1   ;;  %s656_s19 = scalar_lea.hbm %s1504_s6, %s1298_s28 }
 0x24b   : > { %883 = dma.vmem_to_hbm [thread:$0]  (%p1329_p11), %s673_s21, 32, %s675_s18, %s647_s20, %s1234_s10, %s1235_s17, %s1236_s15  }
 0x24c   : > { %s419_s22 = scalar_lea.vmem [#allocation12], %s1422_s12  ;;  %s659_s18 = sshll.u32 %s656_s19, 4  ;;  %s660_s18 = int_to_ptr.hbm [resolvable:$true] %s659_s18 }
 0x24d   : > { %s657_s23 = sshll.u32 %s419_s22, 4  ;;  %s642_s20 = scalar_lea.sflag [#allocation4], %s1396_s11  ;;  %s658_s23 = int_to_ptr.vmem [resolvable:$true] %s657_s23 }
 0x24e   : > { %s1160_s8 = sshra.s32 %s660_s18, 4  ;;  %s1166_s30 = scalar_lea.hbm %s1504_s6, 4  ;;  %s1161_s8 = int_to_ptr.hbm [resolvable:$true] %s1160_s8 }
 0x24f   : > { %s1162_s3 = scalar_lea.hbm %s1161_s8, 2  ;;  %p1167_p0 = scmp.lt.s32.totalorder %s1161_s8, %s1504_s6 }
 0x250   : > { %p1163_p9 = scmp.ne.s32.totalorder %s1161_s8, %s1162_s3  ;;  %p1168_p4 = scmp.lt.s32.totalorder %s1166_s30, %s1162_s3 }
 0x252   : > { %p1164_p10 = pnand %p1163_p9, %p1329_p11  ;;  %p1169_p5 = por %p1168_p4, %p1167_p0 }
 0x254   : > { %p1165_p1 = pneg %p1164_p10 }
 0x256   : > { %p1170_p6 = pnand %p1169_p5, %p1165_p1 }
 0x2b9   : > { %v965_v3 = vpop.permute.xlu1 %964 }
 0x2ba   : > { %v967_v26 = vunpack.i.h.bf16 %v965_v3  ;;  %v966_v27 = vunpack.i.l.bf16 %v965_v3 }
 0x2bc   : > { %v631_v28 = vmul.f32 %v967_v26, %v1416_v9  ;;  %v560_v29 = vmul.f32 %v966_v27, %v1416_v9 }
 0x2be   : > { %v632_v30 = vsel %vm434_vm0, %v631_v28, 0.0  ;;  %v561_v31 = vsel %vm434_vm0, %v560_v29, 0.0 }
 0x2bf   : > { %v633_v32 = vrot.slane %v632_v30, 4  ;;  %v562_v33 = vrot.slane %v561_v31, 4 }
 0x2c1   : > { %v634_v34 = vadd.f32 %v633_v32, %v632_v30  ;;  %v563_v35 = vadd.f32 %v562_v33, %v561_v31 }
 0x2c3   : > { %v635_v36 = vrot.slane %v634_v34, 2  ;;  %v564_v37 = vrot.slane %v563_v35, 2 }
 0x2c5   : > { %v636_v38 = vadd.f32 %v635_v36, %v634_v34  ;;  %v565_v39 = vadd.f32 %v564_v37, %v563_v35 }
 0x2c7   : > { %v637_v9 = vrot.slane %v636_v38, 1  ;;  %v566_v40 = vrot.slane %v565_v39, 1 }
 0x2c9   : > { %v638_v41 = vadd.f32 %v637_v9, %v636_v38  ;;  %v567_v42 = vadd.f32 %v566_v40, %v565_v39 }
 0x2cb   : > { %859 = vst.msk [vmem:[%s419_s22 + $0x1] sm:$0x1] %vm568_vm13, %v638_v41 }
 0x2cc   : > { %569 = vst.msk [vmem:[%s419_s22] sm:$0x1] %vm568_vm13, %v567_v42 }
 0x2cd   : > { %1173 = shalt.err (!%p1170_p6)
}
 0x2ce   : > { %882 = dma.vmem_to_hbm [thread:$0]  (%p1329_p11), %s658_s23, 32, %s660_s18, %s642_s20, %s1234_s10, %s1235_s17, %s1236_s15  }
 0x2cf PF: > { %s689_s16 = sand.u32 1, %s1212_s24   ;;  %p900_p13 = pnand %p840_p2, %p1333_p12 }
 0x2d0   : > { %s690_s29 = scalar_lea.sflag [#allocation4], %s689_s16 }
 0x2d1   : > { %p901_p3 = pneg %p900_p13 }
 0x2d3   : > { %1203 = dma.done.wait (%p901_p3), %s690_s29, 32  }
 0x2d4   : > { %1205 = vsyncadd (%p901_p3), %s690_s29, 4294967264  ;;  %s700_s14 = scalar_lea.sflag [#allocation14], %s689_s16 }
 0x2d5   : > { %1207 = dma.done.wait (%p901_p3), %s700_s14, 32  }
 0x2d6   : > { %1209 = vsyncadd (%p901_p3), %s700_s14, 4294967264  ;;  %s1523_s27 = sld [smem:[#allocation20_spill]]  ;;  %s1525_s24 = smov %s1216_s25 }
 0x2d7   : > { %s1524_s13 = sld [smem:[#allocation21_spill]]  ;;  %s1526_s25 = smov %s1220_s26 }
 0x2dc   : > { %p26_p11 = scmp.ge.s32.totalorder %s1523_s27, 4  }
 0x2dd   : > { %s1527_s26 = smov %s1524_s13 }
 0x2de   :  { %28 = sbr.rel (!%p26_p11) target bundleno = 12 (0xc), region = 167 }
 0x2e3   :  { %706 = vsyncpa [#allocation3], 1 }
 0x2e4   :  { %708 = vsyncpa [#allocation3 + $0x1], 1 }
 0x2e5   :  { %709 = vsyncpa [#allocation6], 1 }
 0x2e6   :  { %710 = vsyncpa [#allocation9], 1 }
 0x2e7   :  { %711 = vsyncpa [#allocation4], 1 }
 0x2e8   :  { %713 = vsyncpa [#allocation4 + $0x1], 1 }
 0x2e9   :  { %714 = vsyncpa [#allocation14], 1 }
 0x2ea   :  { %716 = vsyncpa [#allocation14 + $0x1], 1 }

</bundles_post_ra>
